<compile_context>
chip_gen: v5e
topology: v5e:2x2
jax: 0.10.0
libtpu: 0.0.40
codegen_flags: <defaults>
</compile_context>

<pallas_src>
import functools
import math

import jax
import jax.numpy as jnp
from jax.experimental import pallas as pl
from jax.experimental.pallas import tpu as pltpu


_NEG_BIG = -1e30
_TI_MAX = 256                      # dest-node tile (sublane axis)
_TJ_MAX = 512                      # source-node tile (lane axis of adj/e/p tiles)
_VMEM_LIMIT = 48 * 1024 * 1024     # explicit scoped VMEM; fits v7x 64 MiB physical


def _round_up(a, b):
    return (a + b - 1) // b * b


# ------------------------------------------------------------------ kernel 1 --
def _project_kernel(x_ref, w_ref, wad_ref, xw_ref, al_ref):
    """xw = x @ W (bf16 out), al = x @ W_ad (f32 attention logits, lane-padded)."""
    xb = x_ref[...].astype(jnp.bfloat16)
    xw = jnp.dot(xb, w_ref[...], preferred_element_type=jnp.float32)
    xw_ref[...] = xw.astype(xw_ref.dtype)
    al_ref[...] = jnp.dot(xb, wad_ref[...], preferred_element_type=jnp.float32)


# ------------------------------------------------------------------ kernel 2 --
def _attn_ode_kernel(a_dst_ref, a_srcT_ref, xw_ref, adj_ref, x_ref, x0_ref,
                     bias_ref, alpha_ref, beta_ref, out_ref,
                     m_sc, l_sc, acc_sc, *, heads, fo, negative_slope):
    j = pl.program_id(1)

    @pl.when(j == 0)
    def _():
        m_sc[...] = jnp.full_like(m_sc, -jnp.inf)
        l_sc[...] = jnp.zeros_like(l_sc)
        acc_sc[...] = jnp.zeros_like(acc_sc)

    # Edge mask for this (i-block, j-block) tile, hoisted out of the head loop.
    edge = adj_ref[...] != 0                                        # [TI, TJ] bool

    for h in range(heads):                                          # static unroll
        a_dst = a_dst_ref[:, h:h + 1]                               # [TI, 1]  f32
        a_src = a_srcT_ref[h:h + 1, :]                              # [1, TJ]  f32 (lane-dense)
        e = a_dst + a_src                                           # [TI, TJ]
        e = jnp.where(e > 0, e, negative_slope * e)                 # LeakyReLU
        e = jnp.where(edge, e, _NEG_BIG)                            # scalar fill, no full_like

        m_prev = m_sc[:, h:h + 1]
        m_new = jnp.maximum(m_prev, jnp.max(e, axis=-1, keepdims=True))
        corr = jnp.exp(m_prev - m_new)                              # rescale old stats
        p = jnp.exp(e - m_new)                                      # [TI, TJ] f32

        l_sc[:, h:h + 1] = corr * l_sc[:, h:h + 1] + jnp.sum(p, axis=-1, keepdims=True)
        pv = jnp.dot(p.astype(jnp.bfloat16), xw_ref[:, h * fo:(h + 1) * fo],
                     preferred_element_type=jnp.float32)            # [TI, Fo]
        acc_sc[:, h * fo:(h + 1) * fo] = corr * acc_sc[:, h * fo:(h + 1) * fo] + pv
        m_sc[:, h:h + 1] = m_new

    @pl.when(j == pl.num_programs(1) - 1)
    def _():
        outs = []
        for h in range(heads):
            inv_l = pl.reciprocal(l_sc[:, h:h + 1], approx=True)    # EUP slot
            outs.append(acc_sc[:, h * fo:(h + 1) * fo] * inv_l)
        ax = outs[0] if heads == 1 else jnp.concatenate(outs, axis=-1)
        ax = ax + bias_ref[...]
        alpha = jax.nn.sigmoid(alpha_ref[0])          # opt['no_alpha_sigmoid'] = False
        f = alpha * (ax - x_ref[...])
        f = f + beta_ref[0] * x0_ref[...]             # opt['add_source'] = True
        out_ref[...] = f.astype(out_ref.dtype)


# ------------------------------------------------------------------- wrapper --
def attention_laplacian_ode(x, w, att_src, att_dst, bias, adj, x0,
                            alpha_train, beta_train, *, negative_slope=0.2):
    n, fin = x.shape
    heads, fo = att_src.shape
    hfo = heads * fo
    assert w.shape == (fin, hfo)
    # The ODE update `alpha * (ax - x)` requires heads * out_channels == in_channels.
    assert hfo == fin, "AttentionLaplacianODEFunc needs heads*out_channels == in_channels"

    # Weight prep: fold attention vectors into the projection so a_src/a_dst are
    # produced by the MXU as extra output columns (lane-padded to >=128).
    w_heads = w.reshape(fin, heads, fo)
    c_src = jnp.einsum('fhk,hk->fh', w_heads, att_src)     # [Fin, H]
    c_dst = jnp.einsum('fhk,hk->fh', w_heads, att_dst)     # [Fin, H]
    w_ad = jnp.concatenate([c_src, c_dst], axis=1)         # [Fin, 2H]
    alp = _round_up(2 * heads, 128)                        # lane-dense logits output
    w_ad = jnp.pad(w_ad, ((0, 0), (0, alp - 2 * heads)))

    # Padding / tile sizes (node axis padded so TI and TJ divide it evenly).
    n0 = _round_up(n, 128)
    ti = min(_TI_MAX, n0)
    tj = min(_TJ_MAX, n0)
    npad = _round_up(n0, (ti * tj) // math.gcd(ti, tj))

    xp = jnp.pad(x.astype(jnp.float32), ((0, npad - n), (0, 0)))
    x0p = jnp.pad(x0.astype(jnp.float32), ((0, npad - n), (0, 0)))
    adj_i8 = jnp.pad((adj != 0).astype(jnp.int8), ((0, npad - n), (0, npad - n)))

    # Kernel 1: projection + attention logits (bf16 MXU, f32 accumulation).
    xw, al = pl.pallas_call(
        _project_kernel,
        grid=(npad // ti,),
        in_specs=[
            pl.BlockSpec((ti, fin), lambda i: (i, 0)),
            pl.BlockSpec((fin, hfo), lambda i: (0, 0)),
            pl.BlockSpec((fin, alp), lambda i: (0, 0)),
        ],
        out_specs=[
            pl.BlockSpec((ti, hfo), lambda i: (i, 0)),
            pl.BlockSpec((ti, alp), lambda i: (i, 0)),
        ],
        out_shape=[
            jax.ShapeDtypeStruct((npad, hfo), jnp.bfloat16),
            jax.ShapeDtypeStruct((npad, alp), jnp.float32),
        ],
        compiler_params=pltpu.CompilerParams(
            dimension_semantics=("parallel",),
            vmem_limit_bytes=_VMEM_LIMIT),
    )(xp, w.astype(jnp.bfloat16), w_ad.astype(jnp.bfloat16))

    a_srcT = al[:, :heads].T                 # [H, Np]  lane-dense source logits
    a_dst = al[:, heads:2 * heads]           # [Np, H]  dest logits

    # Kernel 2: flash-style masked softmax aggregation + fused ODE update.
    kernel = functools.partial(_attn_ode_kernel, heads=heads, fo=fo,
                               negative_slope=negative_slope)
    smem = pl.BlockSpec(memory_space=pltpu.MemorySpace.SMEM)
    out = pl.pallas_call(
        kernel,
        grid=(npad // ti, npad // tj),
        in_specs=[
            pl.BlockSpec((ti, heads), lambda i, j: (i, 0)),        # a_dst  (i-resident)
            pl.BlockSpec((heads, tj), lambda i, j: (0, j)),        # a_src^T (j-stream)
            pl.BlockSpec((tj, hfo), lambda i, j: (j, 0)),          # xw bf16 (j-stream)
            pl.BlockSpec((ti, tj), lambda i, j: (i, j),
                         pipeline_mode=pl.Buffered(3)),            # adj int8 stream
            pl.BlockSpec((ti, fin), lambda i, j: (i, 0)),          # x   (i-resident)
            pl.BlockSpec((ti, fin), lambda i, j: (i, 0)),          # x0  (i-resident)
            pl.BlockSpec((1, hfo), lambda i, j: (0, 0)),           # bias
            smem,                                                  # alpha_train
            smem,                                                  # beta_train
        ],
        out_specs=pl.BlockSpec((ti, fin), lambda i, j: (i, 0)),
        out_shape=jax.ShapeDtypeStruct((npad, fin), jnp.float32),
        scratch_shapes=[
            pltpu.VMEM((ti, heads), jnp.float32),   # running max  m
            pltpu.VMEM((ti, heads), jnp.float32),   # running sum  l
            pltpu.VMEM((ti, hfo), jnp.float32),     # running weighted sum
        ],
        compiler_params=pltpu.CompilerParams(
            dimension_semantics=("parallel", "arbitrary"),
            vmem_limit_bytes=_VMEM_LIMIT),
    )(a_dst, a_srcT, xw, adj_i8, xp, x0p, bias.astype(jnp.float32),
      alpha_train, beta_train)
    return out[:n]


# ------------------------------------------------------------------ reference --
def _reference(x, w, att_src, att_dst, bias, adj, x0, alpha_train, beta_train, slope):
    xw = x @ w
    heads = att_src.shape[0]
    fo = xw.shape[1] // heads
    outs = []
    for h in range(heads):
        xh = xw[:, h * fo:(h + 1) * fo]
        a_s = (xh * att_src[h]).sum(-1)
        a_d = (xh * att_dst[h]).sum(-1)
        e = a_d[:, None] + a_s[None, :]
        e = jnp.where(e > 0, e, slope * e)
        e = jnp.where(adj > 0, e, -1e30)
        attn = jax.nn.softmax(e, axis=-1)
        outs.append(attn @ xh)
    ax = (outs[0] if heads == 1 else jnp.concatenate(outs, -1)) + bias
    alpha = jax.nn.sigmoid(alpha_train[0])
    return alpha * (ax - x) + beta_train[0] * x0


if __name__ == "__main__":
    # opt = {'heads': 1, 'leaky_relu_slope': 0.2, 'no_alpha_sigmoid': False, 'add_source': True}
    N, FIN, HEADS = 64, 32, 1          # heads=1 so ax and x shapes match (as the module requires)
    SLOPE = 0.2

    key = jax.random.PRNGKey(0)
    k_x, k_w, k_as, k_ad, k_adj, k_x0 = jax.random.split(key, 6)

    x = jax.random.normal(k_x, (N, FIN), jnp.float32)
    x0 = jax.random.normal(k_x0, (N, FIN), jnp.float32)

    # GATConv parameters (deterministic synthetic init; bias zeros as in PyG default).
    w = jax.random.normal(k_w, (FIN, HEADS * FIN), jnp.float32) / jnp.sqrt(FIN)
    att_src = jax.random.normal(k_as, (HEADS, FIN), jnp.float32) * 0.1
    att_dst = jax.random.normal(k_ad, (HEADS, FIN), jnp.float32) * 0.1
    bias = jnp.zeros((1, HEADS * FIN), jnp.float32)

    # Dense adjacency mask adj[i, j] = 1 iff edge j -> i; add self-loops (GATConv default).
    adj = (jax.random.uniform(k_adj, (N, N)) < 0.15).astype(jnp.float32)
    adj = jnp.maximum(adj, jnp.eye(N, dtype=jnp.float32))

    # ODE-func scalar parameters, initialized to 0.0 exactly as in __init__.
    alpha_train = jnp.zeros((1,), jnp.float32)
    beta_train = jnp.zeros((1,), jnp.float32)

    out = attention_laplacian_ode(x, w, att_src, att_dst, bias, adj, x0,
                                  alpha_train, beta_train, negative_slope=SLOPE)
    out = jax.block_until_ready(out)

    ref = _reference(x, w, att_src, att_dst, bias, adj, x0,
                     alpha_train, beta_train, SLOPE)
    assert out.shape == (N, FIN)
    # bf16 MXU operands + approx reciprocal vs pure-f32 reference -> looser tolerance.
    assert jnp.allclose(out, ref, atol=5e-2, rtol=5e-2), "mismatch vs JAX reference"

    print("KERNEL_OK")
</pallas_src>

<mosaic_0001>
module attributes {stable_mosaic.version = 11 : i64} {
  func.func @_project_kernel(%arg0: i32, %arg1: memref<128x32xf32, #tpu.memory_space<vmem>>, %arg2: memref<32x32xbf16, #tpu.memory_space<vmem>>, %arg3: memref<32x128xbf16, #tpu.memory_space<vmem>>, %arg4: memref<128x32xbf16, #tpu.memory_space<vmem>>, %arg5: memref<128x128xf32, #tpu.memory_space<vmem>>) attributes {dimension_semantics = [#tpu.dimension_semantics<parallel>], iteration_bounds = array<i64: 1>, scalar_prefetch = 0 : i64, scratch_operands = 0 : i64, tpu.core_type = #tpu.core_type<tc>, window_params = [{transform_indices = @transform_0, window_bounds = array<i64: 128, 32>}, {pipeline_mode = #tpu.pipeline_mode<synchronous>, transform_indices = @transform_1, window_bounds = array<i64: 32, 32>}, {pipeline_mode = #tpu.pipeline_mode<synchronous>, transform_indices = @transform_2, window_bounds = array<i64: 32, 128>}, {transform_indices = @transform_3, window_bounds = array<i64: 128, 32>}, {transform_indices = @transform_4, window_bounds = array<i64: 128, 128>}]} {
    %c0 = arith.constant 0 : index
    %c0_0 = arith.constant 0 : index
    %0 = vector.load %arg1[%c0, %c0_0] : memref<128x32xf32, #tpu.memory_space<vmem>>, vector<128x32xf32>
    %1 = arith.truncf %0 : vector<128x32xf32> to vector<128x32xbf16>
    %c0_1 = arith.constant 0 : index
    %c0_2 = arith.constant 0 : index
    %2 = vector.load %arg2[%c0_1, %c0_2] : memref<32x32xbf16, #tpu.memory_space<vmem>>, vector<32x32xbf16>
    %cst = arith.constant dense<0.000000e+00> : vector<128x32xf32>
    %3 = tpu.matmul %1, %2, %cst {dimension_numbers = #tpu.dot_dimension_numbers<[1], [0], [0], [1], [0, 0, 1, 1], [], []>} : vector<128x32xbf16>, vector<32x32xbf16>, vector<128x32xf32> -> vector<128x32xf32>
    %4 = arith.truncf %3 : vector<128x32xf32> to vector<128x32xbf16>
    %c0_3 = arith.constant 0 : index
    %c0_4 = arith.constant 0 : index
    %5 = vector.load %arg4[%c0_3, %c0_4] : memref<128x32xbf16, #tpu.memory_space<vmem>>, vector<128x32xbf16>
    tpu.vector_store %arg4[%c0_3, %c0_4], %4 {strides = array<i32>} : memref<128x32xbf16, #tpu.memory_space<vmem>>, vector<128x32xbf16>,
    %c0_5 = arith.constant 0 : index
    %c0_6 = arith.constant 0 : index
    %6 = vector.load %arg3[%c0_5, %c0_6] : memref<32x128xbf16, #tpu.memory_space<vmem>>, vector<32x128xbf16>
    %cst_7 = arith.constant dense<0.000000e+00> : vector<128x128xf32>
    %7 = tpu.matmul %1, %6, %cst_7 {dimension_numbers = #tpu.dot_dimension_numbers<[1], [0], [0], [1], [0, 0, 1, 1], [], []>} : vector<128x32xbf16>, vector<32x128xbf16>, vector<128x128xf32> -> vector<128x128xf32>
    %c0_8 = arith.constant 0 : index
    %c0_9 = arith.constant 0 : index
    %8 = vector.load %arg5[%c0_8, %c0_9] : memref<128x128xf32, #tpu.memory_space<vmem>>, vector<128x128xf32>
    tpu.vector_store %arg5[%c0_8, %c0_9], %7 {strides = array<i32>} : memref<128x128xf32, #tpu.memory_space<vmem>>, vector<128x128xf32>,
    return
  }
  func.func @transform_0(%arg0: i32) -> (i32, i32) {
    %c0_i32 = arith.constant 0 : i32
    %c0_i32_0 = arith.constant 0 : i32
    return %arg0, %c0_i32 : i32, i32
  }
  func.func @transform_1(%arg0: i32) -> (i32, i32) {
    %c0_i32 = arith.constant 0 : i32
    %c0_i32_0 = arith.constant 0 : i32
    %c0_i32_1 = arith.constant 0 : i32
    return %c0_i32, %c0_i32_0 : i32, i32
  }
  func.func @transform_2(%arg0: i32) -> (i32, i32) {
    %c0_i32 = arith.constant 0 : i32
    %c0_i32_0 = arith.constant 0 : i32
    %c0_i32_1 = arith.constant 0 : i32
    return %c0_i32, %c0_i32_0 : i32, i32
  }
  func.func @transform_3(%arg0: i32) -> (i32, i32) {
    %c0_i32 = arith.constant 0 : i32
    %c0_i32_0 = arith.constant 0 : i32
    return %arg0, %c0_i32 : i32, i32
  }
  func.func @transform_4(%arg0: i32) -> (i32, i32) {
    %c0_i32 = arith.constant 0 : i32
    %c0_i32_0 = arith.constant 0 : i32
    return %arg0, %c0_i32 : i32, i32
  }
}

</mosaic_0001>

<bundles_post_ra>
// kernel: tpu_custom_call.1
= control target key start
LH: loop header
LB: loop body
LE: loop exit
PB: predicated region body
PF: predicated region fallthrough
CT: control target
= control target key end

     0   :  { %s508_s0 = inlined_call_operand.vmem [shape: f32[128,32], index: 0, kind: input, shape index: {}]   ;;  %s509_s1 = inlined_call_operand.vmem [shape: bf16[32,32], index: 1, kind: input, shape index: {}]   ;;  %s510_s2 = inlined_call_operand.vmem [shape: bf16[32,128], index: 2, kind: input, shape index: {}]   ;;  %s511_s3 = inlined_call_operand.vmem [shape: bf16[128,32], index: 3, kind: output, shape index: {0}]   ;;  %s512_s4 = inlined_call_operand.hbm [shape: f32[128,128], index: 4, kind: output, shape index: {1}]  }
   0x1   :  { %v301_v0 = vld [vmem:[%s509_s1 + $0x8] sm:$0xff]  ;;  %v300_v2 = vld [vmem:[%s509_s1] sm:$0xff] }
   0x2   :  { %v303_v1 = vld [vmem:[%s510_s2 + $0x8] sm:$0xff]  ;;  %v18_v3 = vld [vmem:[%s508_s0] sm:$0xff]  ;;  %89 = vmatpush.bf16.msra.mxu0 %v301_v0  ;;  %304 = vmatpush.bf16.msra.mxu2 %v301_v0 }
   0x3   :  { %v19_v4 = vld [vmem:[%s508_s0 + $0x8] sm:$0xff]  ;;  %v26_v5 = vld [vmem:[%s508_s0 + $0x40] sm:$0xff]  ;;  %187 = vmatpush.bf16.msra.mxu1 %v303_v1  ;;  %306 = vmatpush.bf16.msra.mxu3 %v303_v1 }
   0x4   :  { %v27_v6 = vld [vmem:[%s508_s0 + $0x48] sm:$0xff]  ;;  %v302_v7 = vld [vmem:[%s510_s2] sm:$0xff] }
   0x5   :  { %10 = vsyncpa [#allocation3], 0  ;;  %v34_v8 = vpack.c.bf16 %v19_v4, %v18_v3  ;;  %v38_v9 = vpack.c.bf16 %v27_v6, %v26_v5  ;;  %vm58_vm0 = vcmask 261120   ;;  %v20_v10 = vld [vmem:[%s508_s0 + $0x10] sm:$0xff]  ;;  %v21_v11 = vld [vmem:[%s508_s0 + $0x18] sm:$0xff]  ;;  %vm148_vm1 = vcmask 257024  }
   0x6   :  { %90 = vmatpush.bf16.msra.mxu0 %v300_v2  ;;  %305 = vmatpush.bf16.msra.mxu2 %v300_v2  ;;  %v28_v12 = vld [vmem:[%s508_s0 + $0x50] sm:$0xff]  ;;  %v29_v13 = vld [vmem:[%s508_s0 + $0x58] sm:$0xff]  ;;  %v35_v14 = vpack.c.bf16 %v21_v11, %v20_v10  ;;  %v22_v16 = vld [vmem:[%s508_s0 + $0x20] sm:$0xff]  ;;  %s337_s28 = smov [#allocation2]   ;;  %s254_s30 = sshll.u32 %s512_s4, 4  ;;  %s255_s30 = int_to_ptr.hbm [resolvable:$true] %s254_s30 }
   0x7   :  { %188 = vmatpush.bf16.msra.mxu1 %v302_v7  ;;  %307 = vmatpush.bf16.msra.mxu3 %v302_v7  ;;  %v39_v15 = vpack.c.bf16 %v29_v13, %v28_v12  ;;  %v23_v17 = vld [vmem:[%s508_s0 + $0x28] sm:$0xff]  ;;  %v30_v18 = vld [vmem:[%s508_s0 + $0x60] sm:$0xff]  ;;  %v24_v22 = vld [vmem:[%s508_s0 + $0x30] sm:$0xff]  ;;  %s338_s6 = smov 128   ;;  %s339_s7 = smov 8  }
   0x8   :  { %v31_v19 = vld [vmem:[%s508_s0 + $0x68] sm:$0xff]  ;;  %v36_v20 = vpack.c.bf16 %v23_v17, %v22_v16  ;;  %v25_v23 = vld [vmem:[%s508_s0 + $0x38] sm:$0xff]  ;;  %v32_v24 = vld [vmem:[%s508_s0 + $0x70] sm:$0xff] }
   0x9   :  { %276 = vmatmul.msk.bf16.vlgmr.msra.gmra.mxu0 %vm58_vm0, %v34_v8  ;;  %280 = vmatmul.msk.bf16.vlgmr.msra.gmra.mxu2 %vm58_vm0, %v38_v9  ;;  %v40_v21 = vpack.c.bf16 %v31_v19, %v30_v18  ;;  %v33_v25 = vld [vmem:[%s508_s0 + $0x78] sm:$0xff]  ;;  %v37_v26 = vpack.c.bf16 %v25_v23, %v24_v22  ;;  %s252_s0 = sshll.u32 %s337_s28, 4  ;;  %s253_s0 = int_to_ptr.vmem [resolvable:$true] %s252_s0 }
   0xa   :  { %292 = vmatmul.msk.bf16.vlgmr.msra.gmra.mxu1 %vm58_vm0, %v34_v8  ;;  %296 = vmatmul.msk.bf16.vlgmr.msra.gmra.mxu3 %vm58_vm0, %v38_v9  ;;  %v41_v27 = vpack.c.bf16 %v33_v25, %v32_v24 }
  0x19   :  { %277 = vmatmul.msk.bf16.gmra.mxu0 %vm58_vm0, %v35_v14  ;;  %281 = vmatmul.msk.bf16.gmra.mxu2 %vm58_vm0, %v39_v15 }
  0x1a   :  { %293 = vmatmul.msk.bf16.gmra.mxu1 %vm58_vm0, %v35_v14  ;;  %297 = vmatmul.msk.bf16.gmra.mxu3 %vm58_vm0, %v39_v15 }
  0x29   :  { %278 = vmatmul.msk.bf16.gmra.mxu0 %vm58_vm0, %v36_v20  ;;  %282 = vmatmul.msk.bf16.gmra.mxu2 %vm58_vm0, %v40_v21 }
  0x2a   :  { %294 = vmatmul.msk.bf16.gmra.mxu1 %vm58_vm0, %v36_v20  ;;  %298 = vmatmul.msk.bf16.gmra.mxu3 %vm58_vm0, %v40_v21 }
  0x39   :  { %279 = vmatmul.msk.bf16.gmra.mxu0 %vm58_vm0, %v37_v26  ;;  %283 = vmatmul.msk.bf16.gmra.mxu2 %vm58_vm0, %v41_v27 }
  0x3a   :  { %295 = vmatmul.msk.bf16.gmra.mxu1 %vm58_vm0, %v37_v26  ;;  %299 = vmatmul.msk.bf16.gmra.mxu3 %vm58_vm0, %v41_v27 }
  0x86   :  { %v92_v28 = vpop.f32.mrf.mxu0 }
  0x87   :  { %v132_v29 = vpack.c.bf16 %v92_v28, %v92_v28  ;;  %v190_v30 = vpop.f32.mrf.mxu1 }
  0x88   :  { %230 = vst [vmem:[#allocation2] sm:$0xff] %v190_v30 }
  0x89   :  { %149 = vst.msk [vmem:[%s511_s3] sm:$0xf] %vm148_vm1, %v132_v29 }
  0x8c   :  { %v112_v31 = vpop.f32.mrf.mxu2 }
  0x8d   :  { %v140_v32 = vpack.c.bf16 %v112_v31, %v112_v31  ;;  %v210_v33 = vpop.f32.mrf.mxu3 }
  0x8e   :  { %238 = vst [vmem:[#allocation2 + $0x40] sm:$0xff] %v210_v33  ;;  %v94_v34 = vpop.f32.mrf.mxu0 }
  0x8f   :  { %157 = vst.msk [vmem:[%s511_s3 + $0x20] sm:$0xf] %vm148_vm1, %v140_v32  ;;  %v133_v35 = vpack.c.bf16 %v94_v34, %v94_v34  ;;  %v192_v36 = vpop.f32.mrf.mxu1 }
  0x90   :  { %231 = vst [vmem:[#allocation2 + $0x8] sm:$0xff] %v192_v36 }
  0x91   :  { %150 = vst.msk [vmem:[%s511_s3 + $0x4] sm:$0xf] %vm148_vm1, %v133_v35 }
  0x94   :  { %v114_v37 = vpop.f32.mrf.mxu2 }
  0x95   :  { %v141_v38 = vpack.c.bf16 %v114_v37, %v114_v37  ;;  %v212_v39 = vpop.f32.mrf.mxu3 }
  0x96   :  { %239 = vst [vmem:[#allocation2 + $0x48] sm:$0xff] %v212_v39  ;;  %v97_v40 = vpop.f32.mrf.mxu0 }
  0x97   :  { %158 = vst.msk [vmem:[%s511_s3 + $0x24] sm:$0xf] %vm148_vm1, %v141_v38  ;;  %v134_v41 = vpack.c.bf16 %v97_v40, %v97_v40  ;;  %v195_v42 = vpop.f32.mrf.mxu1 }
  0x98   :  { %232 = vst [vmem:[#allocation2 + $0x10] sm:$0xff] %v195_v42 }
  0x99   :  { %151 = vst.msk [vmem:[%s511_s3 + $0x8] sm:$0xf] %vm148_vm1, %v134_v41 }
  0x9c   :  { %v117_v43 = vpop.f32.mrf.mxu2 }
  0x9d   :  { %v142_v44 = vpack.c.bf16 %v117_v43, %v117_v43  ;;  %v215_v45 = vpop.f32.mrf.mxu3 }
  0x9e   :  { %240 = vst [vmem:[#allocation2 + $0x50] sm:$0xff] %v215_v45  ;;  %v99_v46 = vpop.f32.mrf.mxu0 }
  0x9f   :  { %159 = vst.msk [vmem:[%s511_s3 + $0x28] sm:$0xf] %vm148_vm1, %v142_v44  ;;  %v135_v47 = vpack.c.bf16 %v99_v46, %v99_v46  ;;  %v197_v48 = vpop.f32.mrf.mxu1 }
  0xa0   :  { %233 = vst [vmem:[#allocation2 + $0x18] sm:$0xff] %v197_v48 }
  0xa1   :  { %152 = vst.msk [vmem:[%s511_s3 + $0xc] sm:$0xf] %vm148_vm1, %v135_v47 }
  0xa4   :  { %v119_v49 = vpop.f32.mrf.mxu2 }
  0xa5   :  { %v143_v50 = vpack.c.bf16 %v119_v49, %v119_v49  ;;  %v217_v51 = vpop.f32.mrf.mxu3 }
  0xa6   :  { %241 = vst [vmem:[#allocation2 + $0x58] sm:$0xff] %v217_v51  ;;  %v102_v52 = vpop.f32.mrf.mxu0 }
  0xa7   :  { %160 = vst.msk [vmem:[%s511_s3 + $0x2c] sm:$0xf] %vm148_vm1, %v143_v50  ;;  %v136_v53 = vpack.c.bf16 %v102_v52, %v102_v52  ;;  %v200_v54 = vpop.f32.mrf.mxu1 }
  0xa8   :  { %234 = vst [vmem:[#allocation2 + $0x20] sm:$0xff] %v200_v54 }
  0xa9   :  { %153 = vst.msk [vmem:[%s511_s3 + $0x10] sm:$0xf] %vm148_vm1, %v136_v53 }
  0xac   :  { %v122_v55 = vpop.f32.mrf.mxu2 }
  0xad   :  { %v144_v56 = vpack.c.bf16 %v122_v55, %v122_v55  ;;  %v220_v57 = vpop.f32.mrf.mxu3 }
  0xae   :  { %242 = vst [vmem:[#allocation2 + $0x60] sm:$0xff] %v220_v57  ;;  %v104_v58 = vpop.f32.mrf.mxu0 }
  0xaf   :  { %161 = vst.msk [vmem:[%s511_s3 + $0x30] sm:$0xf] %vm148_vm1, %v144_v56  ;;  %v137_v59 = vpack.c.bf16 %v104_v58, %v104_v58  ;;  %v202_v60 = vpop.f32.mrf.mxu1 }
  0xb0   :  { %235 = vst [vmem:[#allocation2 + $0x28] sm:$0xff] %v202_v60 }
  0xb1   :  { %154 = vst.msk [vmem:[%s511_s3 + $0x14] sm:$0xf] %vm148_vm1, %v137_v59 }
  0xb4   :  { %v124_v61 = vpop.f32.mrf.mxu2 }
  0xb5   :  { %v145_v62 = vpack.c.bf16 %v124_v61, %v124_v61  ;;  %v222_v63 = vpop.f32.mrf.mxu3 }
  0xb6   :  { %243 = vst [vmem:[#allocation2 + $0x68] sm:$0xff] %v222_v63  ;;  %v107_v0 = vpop.f32.mrf.mxu0 }
  0xb7   :  { %162 = vst.msk [vmem:[%s511_s3 + $0x34] sm:$0xf] %vm148_vm1, %v145_v62  ;;  %v138_v1 = vpack.c.bf16 %v107_v0, %v107_v0  ;;  %v205_v2 = vpop.f32.mrf.mxu1 }
  0xb8   :  { %236 = vst [vmem:[#allocation2 + $0x30] sm:$0xff] %v205_v2 }
  0xb9   :  { %155 = vst.msk [vmem:[%s511_s3 + $0x18] sm:$0xf] %vm148_vm1, %v138_v1 }
  0xbc   :  { %v127_v3 = vpop.f32.mrf.mxu2 }
  0xbd   :  { %v146_v4 = vpack.c.bf16 %v127_v3, %v127_v3  ;;  %v225_v5 = vpop.f32.mrf.mxu3 }
  0xbe   :  { %244 = vst [vmem:[#allocation2 + $0x70] sm:$0xff] %v225_v5  ;;  %v109_v6 = vpop.f32.mrf.mxu0 }
  0xbf   :  { %163 = vst.msk [vmem:[%s511_s3 + $0x38] sm:$0xf] %vm148_vm1, %v146_v4  ;;  %v139_v7 = vpack.c.bf16 %v109_v6, %v109_v6  ;;  %v207_v8 = vpop.f32.mrf.mxu1 }
  0xc0   :  { %237 = vst [vmem:[#allocation2 + $0x38] sm:$0xff] %v207_v8 }
  0xc1   :  { %156 = vst.msk [vmem:[%s511_s3 + $0x1c] sm:$0xf] %vm148_vm1, %v139_v7 }
  0xc4   :  { %v129_v9 = vpop.f32.mrf.mxu2 }
  0xc5   :  { %v147_v10 = vpack.c.bf16 %v129_v9, %v129_v9  ;;  %v227_v11 = vpop.f32.mrf.mxu3 }
  0xc6   :  { %245 = vst [vmem:[#allocation2 + $0x78] sm:$0xff] %v227_v11 }
  0xc7   :  { %164 = vst.msk [vmem:[%s511_s3 + $0x3c] sm:$0xf] %vm148_vm1, %v147_v10 }
  0xc8   :  { %260 = dma.vmem_to_hbm [thread:$0]  %s253_s0, 2048, %s255_s30, [#allocation3], %s338_s6, %s338_s6, %s339_s7  }
  0xc9   :  { %335 = dma.done.wait [#allocation3], 2048  }
  0xca   :  { %336 = vsyncadd [#allocation3], 4294965248 }
  0xcb   :  { %267 = vsyncpa [#allocation3], 1 }

</bundles_post_ra>
